<compile_context>
chip_gen: v7x
topology: tpu7x:2x2x1
jax: 0.10.0
libtpu: 0.0.40
codegen_flags: <defaults>
</compile_context>

<pallas_src>
import functools

import jax
import jax.numpy as jnp
from jax.experimental import pallas as pl
from jax.experimental.pallas import tpu as pltpu


def _round_up(x, m):
    return ((x + m - 1) // m) * m


def _vmem_capacity_bytes(default=64 * 1024 * 1024):
    try:
        info = pltpu.get_tpu_info()
        return int(getattr(info, "vmem_capacity_bytes", default))
    except Exception:
        return default


def _pick_tm(Kp, Dp, budget_bytes):
    """Largest M-tile whose (double-buffered inputs/outputs + intermediates) fits the budget."""
    for tm in (1024, 512, 256, 128, 64, 32, 16, 8):
        floats = (
            4 * tm * Dp            # z in + z_q out, double-buffered
            + 2 * Kp * Dp + 2 * Kp # codebook + ||c||^2 (conservatively double-buffered)
            + 2 * tm * Kp          # score + one_hot intermediates
            + 3 * tm * Dp          # z_q / diff / misc temporaries
            + 2 * tm + 256         # idx + sse outputs
        )
        if 4 * floats <= budget_bytes:
            return tm
    return 8


def _vq_kernel(z_ref, cb_ref, cbsq_ref, zq_ref, idx_ref, sse_ref, *,
               m_valid, use_bf16_distance):
    """One M-tile of the vector quantizer.

    z_ref   : (tm, Dp)  input features tile (D zero-padded to Dp)
    cb_ref  : (Kp, Dp)  full codebook (padded rows are zero), resident across the grid
    cbsq_ref: (1, Kp)   ||c||^2 per code; padded codes hold a huge value (never win argmin)
    zq_ref  : (tm, Dp)  quantized output tile
    idx_ref : (1, tm)   argmin codebook indices (lane-dense int32)
    sse_ref : (1, 128)  per-tile masked sum of squared errors (value broadcast on lanes)
    """
    z = z_ref[...].astype(jnp.float32)      # (tm, Dp)
    cb = cb_ref[...].astype(jnp.float32)    # (Kp, Dp)
    cb_sq = cbsq_ref[...]                   # (1, Kp)
    tm, _ = z.shape
    Kp = cb.shape[0]

    # cross = z @ cb^T, contracting over D directly (no materialized transpose).
    if use_bf16_distance:
        lhs, rhs = z.astype(jnp.bfloat16), cb.astype(jnp.bfloat16)
    else:
        lhs, rhs = z, cb
    cross = jax.lax.dot_general(
        lhs, rhs, (((1,), (1,)), ((), ())),
        preferred_element_type=jnp.float32)                     # (tm, Kp) on MXU

    # argmin(||z||^2 + ||c||^2 - 2 z.c) == argmin(||c||^2 - 2 z.c); ||z||^2 is row-constant.
    score = cb_sq - 2.0 * cross                                 # (tm, Kp)
    idx = jnp.argmin(score, axis=1).astype(jnp.int32)           # (tm,)

    # one-hot scatter + matmul gather, mirroring min_encodings @ codebook
    one_hot = (jax.lax.broadcasted_iota(jnp.int32, (tm, Kp), 1)
               == idx[:, None]).astype(jnp.float32)             # (tm, Kp)
    zq = jnp.dot(one_hot, cb, preferred_element_type=jnp.float32)  # (tm, Dp) on MXU

    zq_ref[...] = zq.astype(zq_ref.dtype)
    idx_ref[...] = idx[None, :]                                 # lane-dense store

    # Masked per-tile SSE: rows beyond the real M (padding) contribute 0.
    row = pl.program_id(0) * tm + jax.lax.broadcasted_iota(jnp.int32, (tm, 1), 0)
    valid = (row < m_valid).astype(jnp.float32)                 # (tm, 1)
    diff = zq - z
    sse = jnp.sum(valid * (diff * diff))
    sse_ref[...] = jnp.full(sse_ref.shape, sse, dtype=jnp.float32)


def _vq_pallas(z_flat, codebook, cb_sq, *, tm, m_valid, use_bf16_distance,
               vmem_limit_bytes):
    Mp, Dp = z_flat.shape
    Kp = codebook.shape[0]
    n_tiles = Mp // tm

    kernel = functools.partial(_vq_kernel, m_valid=m_valid,
                               use_bf16_distance=use_bf16_distance)

    out_shapes = (
        jax.ShapeDtypeStruct((Mp, Dp), jnp.float32),          # z_q (padded, flattened)
        jax.ShapeDtypeStruct((n_tiles, tm), jnp.int32),       # argmin indices (lane-dense)
        jax.ShapeDtypeStruct((n_tiles, 128), jnp.float32),    # per-tile SSE
    )

    return pl.pallas_call(
        kernel,
        out_shape=out_shapes,
        grid_spec=pltpu.PrefetchScalarGridSpec(
            num_scalar_prefetch=0,
            grid=(n_tiles,),
            in_specs=[
                pl.BlockSpec((tm, Dp), lambda i: (i, 0)),     # z tile
                pl.BlockSpec((Kp, Dp), lambda i: (0, 0)),     # codebook (constant block)
                pl.BlockSpec((1, Kp), lambda i: (0, 0)),      # ||c||^2 (constant block)
            ],
            out_specs=[
                pl.BlockSpec((tm, Dp), lambda i: (i, 0)),
                pl.BlockSpec((1, tm), lambda i: (i, 0)),
                pl.BlockSpec((1, 128), lambda i: (i, 0)),
            ],
        ),
        compiler_params=pltpu.CompilerParams(
            dimension_semantics=("parallel",),
            vmem_limit_bytes=vmem_limit_bytes,
        ),
    )(z_flat, codebook, cb_sq)


def vector_quantizer_forward(z, codebook, gt_indices=None, tm=None,
                             use_bf16_distance=False):
    """Reproduces VectorQuantizer.forward (dist_func='l2').

    Args:
      z:        (B, C, H, W) float, NCHW like the PyTorch module input.
      codebook: (n_e, e_dim) float, nn.Embedding weight (e_dim == C).
    Returns:
      (z_q [B,C,H,W], codebook_loss scalar, 0, min_encoding_indices [B,1,H,W])
    """
    B, C, H, W = z.shape
    n_e, e_dim = codebook.shape
    assert C == e_dim
    M, D, K = B * H * W, e_dim, n_e

    # Lane-aligned padded sizes (zero padding is exact for L2 + gather).
    Dp = _round_up(D, 128)
    Kp = _round_up(K, 128)

    z_flat = jnp.transpose(z, (0, 2, 3, 1)).astype(jnp.float32).reshape(M, D)

    if gt_indices is not None:
        # TODO(synk): visualization-only gt_indices path kept as a plain-JAX gather.
        idx_flat = gt_indices.reshape(M, 1).astype(jnp.int32)
        zq_flat = codebook.astype(jnp.float32)[idx_flat[:, 0]]
        codebook_loss = jnp.mean((zq_flat - z_flat) ** 2)
    else:
        # VMEM-budgeted tile size; larger tiles on 128 MiB parts, smaller on v7x (64 MiB).
        phys = _vmem_capacity_bytes()
        budget = max(12 << 20, int(phys * 0.35))
        vmem_limit = int(min(phys * 0.85, max(32 << 20, 2 * budget)))
        if tm is None:
            tm = _pick_tm(Kp, Dp, budget)
        tm = min(tm, _round_up(M, 8))
        n_tiles = -(-M // tm)
        # Prefer an even tile count (keeps both v7x TensorCores busy).
        if n_tiles > 1 and n_tiles % 2 == 1 and tm >= 256:
            tm //= 2
            n_tiles = -(-M // tm)
        Mp = n_tiles * tm

        zf = jnp.pad(z_flat, ((0, Mp - M), (0, Dp - D)))
        cbp = jnp.pad(codebook.astype(jnp.float32), ((0, Kp - K), (0, Dp - D)))
        cb_sq = jnp.sum(cbp * cbp, axis=1)
        cb_sq = jnp.where(jnp.arange(Kp) < K, cb_sq, 1e30)[None, :]   # mask padded codes

        zq_p, idx_p, sse = _vq_pallas(
            zf, cbp, cb_sq, tm=tm, m_valid=M,
            use_bf16_distance=use_bf16_distance, vmem_limit_bytes=vmem_limit)

        zq_flat = zq_p[:M, :D]
        idx_flat = idx_p.reshape(Mp)[:M].reshape(M, 1)
        codebook_loss = jnp.sum(sse[:, 0]) / (M * D)

    z_q = zq_flat.reshape(B, H, W, D).transpose(0, 3, 1, 2)   # NHWC -> NCHW
    min_encoding_indices = idx_flat.reshape(B, 1, H, W)
    return z_q, codebook_loss, 0, min_encoding_indices


def _reference_forward(z, codebook):
    """Pure-JAX reference matching the PyTorch forward for validation."""
    B, C, H, W = z.shape
    z_nhwc = jnp.transpose(z, (0, 2, 3, 1))
    z_flat = z_nhwc.reshape(-1, C)
    d = (jnp.sum(z_flat ** 2, axis=1, keepdims=True)
         + jnp.sum(codebook ** 2, axis=1)
         - 2.0 * z_flat @ codebook.T)
    idx = jnp.argmin(d, axis=1)
    zq_flat = codebook[idx]
    loss = jnp.mean((zq_flat - z_flat) ** 2)
    z_q = zq_flat.reshape(B, H, W, C).transpose(0, 3, 1, 2)
    return z_q, loss, idx.astype(jnp.int32).reshape(B, 1, H, W)


if __name__ == "__main__":
    key = jax.random.PRNGKey(0)
    k_z, k_cb = jax.random.split(key)

    # Small shapes consistent with the module: channel == e_dim.
    B, C, H, W = 2, 32, 8, 8       # z: (batch, e_dim, H, W)
    n_e, e_dim = 64, C

    z = jax.random.normal(k_z, (B, C, H, W), dtype=jnp.float32)
    # nn.Embedding default init is N(0, 1); deterministic synthetic codebook.
    codebook = jax.random.normal(k_cb, (n_e, e_dim), dtype=jnp.float32)

    z_q, loss, zero, indices = vector_quantizer_forward(z, codebook)
    jax.block_until_ready((z_q, loss, indices))

    # Sanity check against a pure-JAX reference.
    zq_ref, loss_ref, idx_ref = _reference_forward(z, codebook)
    assert jnp.allclose(z_q, zq_ref, atol=1e-5)
    assert jnp.allclose(loss, loss_ref, atol=1e-5)
    assert jnp.array_equal(indices, idx_ref)
    assert zero == 0

    print("KERNEL_OK")
</pallas_src>

<mosaic_0001>
module attributes {stable_mosaic.version = 11 : i64} {
  func.func @_vq_kernel(%arg0: i32, %arg1: memref<128x128xf32, #tpu.memory_space<vmem>>, %arg2: memref<128x128xf32, #tpu.memory_space<vmem>>, %arg3: memref<1x128xf32, #tpu.memory_space<vmem>>, %arg4: memref<128x128xf32, #tpu.memory_space<vmem>>, %arg5: memref<1x128xi32, #tpu.memory_space<vmem>>, %arg6: memref<1x128xf32, #tpu.memory_space<vmem>>) attributes {dimension_semantics = [#tpu.dimension_semantics<parallel>], iteration_bounds = array<i64: 1>, scalar_prefetch = 0 : i64, scratch_operands = 0 : i64, tpu.core_type = #tpu.core_type<tc>, window_params = [{transform_indices = @transform_0, window_bounds = array<i64: 128, 128>}, {pipeline_mode = #tpu.pipeline_mode<synchronous>, transform_indices = @transform_1, window_bounds = array<i64: 128, 128>}, {pipeline_mode = #tpu.pipeline_mode<synchronous>, transform_indices = @transform_2, window_bounds = array<i64: 1, 128>}, {transform_indices = @transform_3, window_bounds = array<i64: 128, 128>}, {transform_indices = @transform_4, window_bounds = array<i64: 1, 128>}, {transform_indices = @transform_5, window_bounds = array<i64: 1, 128>}]} {
    %c0 = arith.constant 0 : index
    %c0_0 = arith.constant 0 : index
    %0 = vector.load %arg1[%c0, %c0_0] : memref<128x128xf32, #tpu.memory_space<vmem>>, vector<128x128xf32>
    %c0_1 = arith.constant 0 : index
    %c0_2 = arith.constant 0 : index
    %1 = vector.load %arg2[%c0_1, %c0_2] : memref<128x128xf32, #tpu.memory_space<vmem>>, vector<128x128xf32>
    %c0_3 = arith.constant 0 : index
    %c0_4 = arith.constant 0 : index
    %2 = vector.load %arg3[%c0_3, %c0_4] : memref<1x128xf32, #tpu.memory_space<vmem>>, vector<1x128xf32>
    %cst = arith.constant dense<0.000000e+00> : vector<128x128xf32>
    %3 = tpu.matmul %0, %1, %cst {dimension_numbers = #tpu.dot_dimension_numbers<[1], [1], [0], [0], [0, 0, 1, 0], [], []>} : vector<128x128xf32>, vector<128x128xf32>, vector<128x128xf32> -> vector<128x128xf32>
    %cst_5 = arith.constant 2.000000e+00 : f32
    %4 = vector.broadcast %cst_5 : f32 to vector<128x128xf32>
    %5 = arith.mulf %4, %3 : vector<128x128xf32>
    %6 = vector.broadcast %2 : vector<1x128xf32> to vector<128x128xf32>
    %7 = arith.subf %6, %5 : vector<128x128xf32>
    %8 = tpu.reduce_index %7 {axis = 1 : i32, kind = #tpu.reduction_kind<arg_min>} : vector<128x128xf32> -> vector<128xi32>
    %9 = tpu.iota {dimensions = array<i32: 1>} : vector<128x128xi32>
    %10 = vector.shape_cast %8 : vector<128xi32> to vector<128x1xi32>
    %11 = vector.broadcast %10 : vector<128x1xi32> to vector<128x128xi32>
    %12 = arith.cmpi eq, %9, %11 : vector<128x128xi32>
    %13 = arith.extui %12 : vector<128x128xi1> to vector<128x128xi32>
    %14 = arith.sitofp %13 : vector<128x128xi32> to vector<128x128xf32>
    %cst_6 = arith.constant dense<0.000000e+00> : vector<128x128xf32>
    %15 = tpu.matmul %14, %1, %cst_6 {dimension_numbers = #tpu.dot_dimension_numbers<[1], [0], [0], [1], [0, 0, 1, 1], [], []>} : vector<128x128xf32>, vector<128x128xf32>, vector<128x128xf32> -> vector<128x128xf32>
    %c0_7 = arith.constant 0 : index
    %c0_8 = arith.constant 0 : index
    %16 = vector.load %arg4[%c0_7, %c0_8] : memref<128x128xf32, #tpu.memory_space<vmem>>, vector<128x128xf32>
    tpu.vector_store %arg4[%c0_7, %c0_8], %15 {strides = array<i32>} : memref<128x128xf32, #tpu.memory_space<vmem>>, vector<128x128xf32>,
    %17 = vector.shape_cast %8 : vector<128xi32> to vector<1x128xi32>
    %c0_9 = arith.constant 0 : index
    %c0_10 = arith.constant 0 : index
    %18 = vector.load %arg5[%c0_9, %c0_10] : memref<1x128xi32, #tpu.memory_space<vmem>>, vector<1x128xi32>
    tpu.vector_store %arg5[%c0_9, %c0_10], %17 {strides = array<i32>} : memref<1x128xi32, #tpu.memory_space<vmem>>, vector<1x128xi32>,
    %c128_i32 = arith.constant 128 : i32
    %19 = arith.muli %arg0, %c128_i32 : i32
    %20 = tpu.iota {dimensions = array<i32: 0>} : vector<128x1xi32>
    %21 = vector.broadcast %19 : i32 to vector<128x1xi32>
    %22 = arith.addi %21, %20 : vector<128x1xi32>
    %c128_i32_11 = arith.constant 128 : i32
    %23 = vector.broadcast %c128_i32_11 : i32 to vector<128x1xi32>
    %24 = arith.cmpi slt, %22, %23 : vector<128x1xi32>
    %25 = arith.extui %24 : vector<128x1xi1> to vector<128x1xi32>
    %26 = arith.sitofp %25 : vector<128x1xi32> to vector<128x1xf32>
    %27 = arith.subf %15, %0 : vector<128x128xf32>
    %28 = arith.mulf %27, %27 : vector<128x128xf32>
    %29 = vector.broadcast %26 : vector<128x1xf32> to vector<128x128xf32>
    %30 = arith.mulf %29, %28 : vector<128x128xf32>
    %31 = vector.shape_cast %30 : vector<128x128xf32> to vector<1x128x128xf32>
    %cst_12 = arith.constant dense<0.000000e+00> : vector<1xf32>
    %32 = vector.multi_reduction <add>, %31, %cst_12 [1, 2] : vector<1x128x128xf32> to vector<1xf32>
    %33 = vector.shape_cast %32 : vector<1xf32> to vector<1x1x1xf32>
    %34 = vector.extract %33[0, 0, 0] : f32 from vector<1x1x1xf32>
    %35 = vector.broadcast %34 : f32 to vector<1x128xf32>
    %c0_13 = arith.constant 0 : index
    %c0_14 = arith.constant 0 : index
    %36 = vector.load %arg6[%c0_13, %c0_14] : memref<1x128xf32, #tpu.memory_space<vmem>>, vector<1x128xf32>
    tpu.vector_store %arg6[%c0_13, %c0_14], %35 {strides = array<i32>} : memref<1x128xf32, #tpu.memory_space<vmem>>, vector<1x128xf32>,
    return
  }
  func.func @transform_0(%arg0: i32) -> (i32, i32) {
    %c0_i32 = arith.constant 0 : i32
    %c0_i32_0 = arith.constant 0 : i32
    return %arg0, %c0_i32 : i32, i32
  }
  func.func @transform_1(%arg0: i32) -> (i32, i32) {
    %c0_i32 = arith.constant 0 : i32
    %c0_i32_0 = arith.constant 0 : i32
    %c0_i32_1 = arith.constant 0 : i32
    return %c0_i32, %c0_i32_0 : i32, i32
  }
  func.func @transform_2(%arg0: i32) -> (i32, i32) {
    %c0_i32 = arith.constant 0 : i32
    %c0_i32_0 = arith.constant 0 : i32
    %c0_i32_1 = arith.constant 0 : i32
    return %c0_i32, %c0_i32_0 : i32, i32
  }
  func.func @transform_3(%arg0: i32) -> (i32, i32) {
    %c0_i32 = arith.constant 0 : i32
    %c0_i32_0 = arith.constant 0 : i32
    return %arg0, %c0_i32 : i32, i32
  }
  func.func @transform_4(%arg0: i32) -> (i32, i32) {
    %c0_i32 = arith.constant 0 : i32
    %c0_i32_0 = arith.constant 0 : i32
    return %arg0, %c0_i32 : i32, i32
  }
  func.func @transform_5(%arg0: i32) -> (i32, i32) {
    %c0_i32 = arith.constant 0 : i32
    %c0_i32_0 = arith.constant 0 : i32
    return %arg0, %c0_i32 : i32, i32
  }
}

</mosaic_0001>

<bundles_post_ra>
// kernel: tpu_custom_call.1
= control target key start
LH: loop header
LB: loop body
LE: loop exit
PB: predicated region body
PF: predicated region fallthrough
CT: control target
= control target key end

     0   :  { %11 = vsyncpa [#allocation3], 0  ;;  %s1461_s0 = inlined_call_operand.hbm [shape: f32[128,128], index: 0, kind: input, shape index: {}]   ;;  %s1462_s1 = inlined_call_operand.hbm [shape: f32[128,128], index: 1, kind: input, shape index: {}]   ;;  %s1463_s2 = inlined_call_operand.vmem [shape: f32[1,128], index: 2, kind: input, shape index: {}]   ;;  %s1464_s3 = inlined_call_operand.hbm [shape: f32[128,128], index: 3, kind: output, shape index: {0}]   ;;  %s1465_s4 = inlined_call_operand.hbm [shape: s32[1,128], index: 4, kind: output, shape index: {1}]   ;;  %s1466_s5 = inlined_call_operand.hbm [shape: f32[1,128], index: 5, kind: output, shape index: {2}]  }
   0x1   :  { %12 = vsyncpa [#allocation6], 0 }
   0x2   :  { %13 = vsyncpa [#allocation4], 0 }
   0x3   :  { %14 = vsyncpa [#allocation9], 0  ;;  %s1219_s18 = smov [#allocation2]   ;;  %s1101_s22 = scalar_lea.hbm %s1461_s0, 2048 }
   0x4   :  { %s20_s19 = sshll.u32 %s1219_s18, 4  ;;  %p1102_p0 = scmp.ne.s32.totalorder %s1461_s0, %s1101_s22  ;;  %s21_s19 = int_to_ptr.vmem [resolvable:$true] %s20_s19 }
   0x5   :  { %p1105_p1 = scmp.lt.u32.totalorder %s1101_s22, %s1461_s0 }
   0x7   :  { %p1107_p2 = pnand %p1105_p1, %p1102_p0 }
   0x9   :  { %1110 = shalt.err (!%p1107_p2)
}
   0xa   :  { %s1111_s27 = scalar_lea.vmem %s21_s19, 2048  ;;  %p1116_p4 = scmp.lt.s32.totalorder %s21_s19, %s21_s19 }
   0xb   :  { %p1112_p3 = scmp.ne.s32.totalorder %s21_s19, %s1111_s27  ;;  %p1117_p5 = scmp.lt.s32.totalorder %s1111_s27, %s1111_s27 }
   0xd   :  { %p1118_p6 = por %p1117_p5, %p1116_p4 }
   0xf   :  { %p1119_p7 = pnand %p1118_p6, %p1112_p3 }
  0x11   :  { %1122 = shalt.err (!%p1119_p7)
}
  0x12   :  { %s1220_s28 = smov 128   ;;  %s1221_s29 = smov 8  }
  0x13   :  { %26 = dma.hbm_to_vmem [thread:$0]  %s1461_s0, 2048, %s21_s19, [#allocation3], %s1220_s28, %s1220_s28, %s1221_s29  }
  0x14   :  { %s1222_s7 = smov [#allocation5]   ;;  %s1123_s11 = scalar_lea.hbm %s1462_s1, 2048 }
  0x15   :  { %s32_s8 = sshll.u32 %s1222_s7, 4  ;;  %p1124_p8 = scmp.ne.s32.totalorder %s1462_s1, %s1123_s11  ;;  %s33_s8 = int_to_ptr.vmem [resolvable:$true] %s32_s8 }
  0x16   :  { %p1127_p9 = scmp.lt.u32.totalorder %s1123_s11, %s1462_s1 }
  0x18   :  { %p1129_p10 = pnand %p1127_p9, %p1124_p8 }
  0x1a   :  { %1132 = shalt.err (!%p1129_p10)
}
  0x1b   :  { %s1133_s16 = scalar_lea.vmem %s33_s8, 2048  ;;  %p1138_p12 = scmp.lt.s32.totalorder %s33_s8, %s33_s8 }
  0x1c   :  { %p1134_p11 = scmp.ne.s32.totalorder %s33_s8, %s1133_s16  ;;  %p1139_p13 = scmp.lt.s32.totalorder %s1133_s16, %s1133_s16 }
  0x1e   :  { %p1140_p0 = por %p1139_p13, %p1138_p12 }
  0x20   :  { %p1141_p1 = pnand %p1140_p0, %p1134_p11 }
  0x22   :  { %1144 = shalt.err (!%p1141_p1)
}
  0x23   :  { %38 = dma.hbm_to_vmem [thread:$0]  %s1462_s1, 2048, %s33_s8, [#allocation6], %s1220_s28, %s1220_s28, %s1221_s29  }
  0x24   :  { %1211 = dma.done.wait [#allocation3], 2048  }
  0x25   :  { %1212 = vsyncadd [#allocation3], 4294965248 }
  0x26   :  { %1213 = dma.done.wait [#allocation6], 2048  }
  0x27   :  { %1214 = vsyncadd [#allocation6], 4294965248  ;;  %v63_v0 = vld [vmem:[#allocation5] sm:$0xff]  ;;  %v64_v1 = vld [vmem:[#allocation5 + $0x8] sm:$0xff]  ;;  %vm515_vm1 = vcmask 130112   ;;  %vm522_vm4 = vcmask 195712  }
  0x28   :  { %v65_v2 = vld [vmem:[#allocation5 + $0x10] sm:$0xff]  ;;  %v1027_v3 = vpack.c.bf16 %v64_v1, %v63_v0  ;;  %v66_v4 = vld [vmem:[#allocation5 + $0x18] sm:$0xff]  ;;  %v67_v6 = vld [vmem:[#allocation5 + $0x20] sm:$0xff]  ;;  %vm529_vm5 = vcmask 261312   ;;  %vm536_vm8 = vcmask 326912   ;;  %vm543_vm9 = vcmask 392512  }
  0x29   :  { %v1031_v5 = vpack.c.bf16 %v66_v4, %v65_v2  ;;  %v68_v7 = vld [vmem:[#allocation5 + $0x28] sm:$0xff]  ;;  %v1287_v8 = vld [vmem:[#allocation2] sm:$0xff]  ;;  %v69_v10 = vld [vmem:[#allocation5 + $0x30] sm:$0xff]  ;;  %vm550_vm12 = vcmask 458112   ;;  %vm557_vm13 = vcmask 523712   ;;  %s1225_s20 = smov [#allocation7]  }
  0x2a   :  { %1028 = vmatprep.subr.bf16.mxu0 %v1027_v3  ;;  %1060 = vmatprep.subr.bf16.mxu1 %v1027_v3  ;;  %v1035_v9 = vpack.c.bf16 %v68_v7, %v67_v6  ;;  %v70_v11 = vld [vmem:[#allocation5 + $0x38] sm:$0xff]  ;;  %v71_v13 = vld [vmem:[#allocation5 + $0x40] sm:$0xff]  ;;  %v72_v14 = vld [vmem:[#allocation5 + $0x48] sm:$0xff]  ;;  %s778_s21 = sshll.u32 %s1225_s20, 4  ;;  %s779_s21 = int_to_ptr.vmem [resolvable:$true] %s778_s21 }
  0x2b   :  { %1030 = vmatpush3.bf16.xpose.msra.mxu0 %v1027_v3  ;;  %1062 = vmatpush3.bf16.msra.mxu1 %v1027_v3  ;;  %v1039_v12 = vpack.c.bf16 %v70_v11, %v69_v10  ;;  %v1043_v15 = vpack.c.bf16 %v72_v14, %v71_v13  ;;  %v73_v16 = vld [vmem:[#allocation5 + $0x50] sm:$0xff]  ;;  %v74_v17 = vld [vmem:[#allocation5 + $0x58] sm:$0xff]  ;;  %v75_v19 = vld [vmem:[#allocation5 + $0x60] sm:$0xff] }
  0x2c   :  { %1032 = vmatprep.subr.bf16.mxu0 %v1031_v5  ;;  %1064 = vmatprep.subr.bf16.mxu1 %v1031_v5  ;;  %v1047_v18 = vpack.c.bf16 %v74_v17, %v73_v16  ;;  %v76_v20 = vld [vmem:[#allocation5 + $0x68] sm:$0xff]  ;;  %v77_v22 = vld [vmem:[#allocation5 + $0x70] sm:$0xff]  ;;  %v78_v23 = vld [vmem:[#allocation5 + $0x78] sm:$0xff] }
  0x2d   :  { %947 = vmatprep.mubr.f32.mxu0 %v1287_v8  ;;  %v1051_v21 = vpack.c.bf16 %v76_v20, %v75_v19  ;;  %v1055_v24 = vpack.c.bf16 %v78_v23, %v77_v22  ;;  %v1290_v25 = vld [vmem:[#allocation2 + $0x8] sm:$0xff]  ;;  %v1292_v26 = vld [vmem:[#allocation2 + $0x10] sm:$0xff]  ;;  %v1296_v27 = vld [vmem:[#allocation2 + $0x18] sm:$0xff] }
  0x2e   :  { %v1298_v28 = vld [vmem:[#allocation2 + $0x20] sm:$0xff]  ;;  %v1302_v29 = vld [vmem:[#allocation2 + $0x28] sm:$0xff]  ;;  %v1304_v30 = vld [vmem:[#allocation2 + $0x30] sm:$0xff] }
  0x2f   :  { %1066 = vmatpush3.bf16.msra.mxu1 %v1031_v5  ;;  %v1308_v31 = vld [vmem:[#allocation2 + $0x38] sm:$0xff]  ;;  %v1310_v32 = vld [vmem:[#allocation2 + $0x40] sm:$0xff]  ;;  %v1314_v33 = vld [vmem:[#allocation2 + $0x48] sm:$0xff] }
  0x30   :  { %1068 = vmatprep.subr.bf16.mxu1 %v1035_v9  ;;  %v1316_v34 = vld [vmem:[#allocation2 + $0x50] sm:$0xff]  ;;  %v1320_v35 = vld [vmem:[#allocation2 + $0x58] sm:$0xff]  ;;  %v1322_v36 = vld [vmem:[#allocation2 + $0x60] sm:$0xff] }
  0x31   :  { %v1326_v37 = vld [vmem:[#allocation2 + $0x68] sm:$0xff]  ;;  %v1328_v38 = vld [vmem:[#allocation2 + $0x70] sm:$0xff]  ;;  %v1332_v39 = vld [vmem:[#allocation2 + $0x78] sm:$0xff] }
  0x32   :  { %v818_v42 = vld [vmem:[%s1463_s2] ss:$0 sm:$0xff]  ;;  %s1224_s2 = smov [#allocation8]  }
  0x33   :  { %1034 = vmatpush3.bf16.xpose.msra.mxu0 %v1031_v5  ;;  %1070 = vmatpush3.bf16.msra.mxu1 %v1035_v9  ;;  %s791_s19 = sshll.u32 %s1224_s2, 4  ;;  %s792_s19 = int_to_ptr.vmem [resolvable:$true] %s791_s19 }
  0x34   :  { %1036 = vmatprep.subr.bf16.mxu0 %v1035_v9  ;;  %1072 = vmatprep.subr.bf16.mxu1 %v1039_v12  ;;  %s1145_s22 = scalar_lea.vmem %s792_s19, 16  ;;  %s1149_s23 = scalar_lea.vmem %s792_s19, 32 }
  0x35   :  { %p1146_p2 = scmp.ne.s32.totalorder %s792_s19, %s1145_s22  ;;  %p1150_p3 = scmp.lt.s32.totalorder %s792_s19, %s792_s19 }
  0x36   :  { %p1151_p4 = scmp.lt.s32.totalorder %s1149_s23, %s1145_s22 }
  0x37   :  { %1074 = vmatpush3.bf16.msra.mxu1 %v1039_v12 }
  0x38   :  { %1076 = vmatprep.subr.bf16.mxu1 %v1043_v15  ;;  %p1152_p5 = por %p1151_p4, %p1150_p3 }
  0x3a   :  { %p1153_p6 = pnand %p1152_p5, %p1146_p2 }
  0x3b   :  { %1038 = vmatpush3.bf16.xpose.msra.mxu0 %v1035_v9  ;;  %1078 = vmatpush3.bf16.msra.mxu1 %v1043_v15 }
  0x3c   :  { %1040 = vmatprep.subr.bf16.mxu0 %v1039_v12  ;;  %1080 = vmatprep.subr.bf16.mxu1 %v1047_v18 }
  0x3f   :  { %1082 = vmatpush3.bf16.msra.mxu1 %v1047_v18 }
  0x40   :  { %1084 = vmatprep.subr.bf16.mxu1 %v1051_v21 }
  0x43   :  { %1042 = vmatpush3.bf16.xpose.msra.mxu0 %v1039_v12  ;;  %1086 = vmatpush3.bf16.msra.mxu1 %v1051_v21 }
  0x44   :  { %1044 = vmatprep.subr.bf16.mxu0 %v1043_v15  ;;  %1088 = vmatprep.subr.bf16.mxu1 %v1055_v24 }
  0x47   :  { %1090 = vmatpush3.bf16.msra.mxu1 %v1055_v24 }
  0x4b   :  { %1046 = vmatpush3.bf16.xpose.msra.mxu0 %v1043_v15 }
  0x4c   :  { %1048 = vmatprep.subr.bf16.mxu0 %v1047_v18 }
  0x53   :  { %1050 = vmatpush3.bf16.xpose.msra.mxu0 %v1047_v18 }
  0x54   :  { %1052 = vmatprep.subr.bf16.mxu0 %v1051_v21 }
  0x5b   :  { %1054 = vmatpush3.bf16.xpose.msra.mxu0 %v1051_v21 }
  0x5c   :  { %1056 = vmatprep.subr.bf16.mxu0 %v1055_v24 }
  0x63   :  { %1058 = vmatpush3.bf16.xpose.msra.mxu0 %v1055_v24 }
  0x6a   :  { %948 = vmatmul.mubr.f32.vlgmr.msra.gmra.mrb[0].mxu0 %v1290_v25 }
  0x6b   :  { %950 = vmatprep.mubr.f32.mxu0 %v1292_v26 }
  0x6e   :  { %951 = vmatmul.mubr.f32.gmra.mrb[2].mxu0 %v1296_v27 }
  0x6f   :  { %953 = vmatprep.mubr.f32.mxu0 %v1298_v28 }
  0x72   :  { %954 = vmatmul.mubr.f32.gmra.mrb[4].mxu0 %v1302_v29 }
  0x73   :  { %956 = vmatprep.mubr.f32.mxu0 %v1304_v30 }
  0x76   :  { %957 = vmatmul.mubr.f32.gmra.mrb[6].mxu0 %v1308_v31 }
  0x77   :  { %959 = vmatprep.mubr.f32.mxu0 %v1310_v32 }
  0x7a   :  { %960 = vmatmul.mubr.f32.gmra.mrb[8].mxu0 %v1314_v33 }
  0x7b   :  { %962 = vmatprep.mubr.f32.mxu0 %v1316_v34 }
  0x7e   :  { %963 = vmatmul.mubr.f32.gmra.mrb[10].mxu0 %v1320_v35 }
  0x7f   :  { %965 = vmatprep.mubr.f32.mxu0 %v1322_v36 }
  0x82   :  { %966 = vmatmul.mubr.f32.gmra.mrb[12].mxu0 %v1326_v37 }
  0x83   :  { %968 = vmatprep.mubr.f32.mxu0 %v1328_v38 }
  0x86   :  { %969 = vmatmul.mubr.f32.gmra.mrb[14].mxu0 %v1332_v39 }
 0x13d   :  { %v949_v40 = vpop.f32.mrb[0].mxu0 }
 0x13e   :  { %v146_v41 = vpop.f32.mrb[1].mxu0  ;;  %v226_v44 = vmul.f32 2.0, %v949_v40 }
 0x13f   :  { %v225_v43 = vmul.f32 2.0, %v146_v41  ;;  %v295_v41 = vlaneseq }
 0x140   :  { %v248_v51 = vsub.f32 %v818_v42, %v226_v44 }
 0x141   :  { %v952_v45 = vpop.f32.mrb[2].mxu0  ;;  %v247_v46 = vsub.f32 %v818_v42, %v225_v43  ;;  %v1338_v43 = vand.u32 127, %v295_v41  ;;  %v1340_v44 = vshrl.u32 %v295_v41, 7 }
 0x142   :  { %v156_v47 = vpop.f32.mrb[3].mxu0  ;;  %v228_v49 = vmul.f32 2.0, %v952_v45 }
 0x143   :  { %v227_v48 = vmul.f32 2.0, %v156_v47  ;;  %263 = vmin.index.xlane.f32.xlu0 %v247_v46  ;;  %v510_v45 = vadd.s32 4294967288, %v1338_v43  ;;  %v517_v46 = vadd.s32 4294967280, %v1338_v43 }
 0x144   :  { %v250_v57 = vsub.f32 %v818_v42, %v228_v49  ;;  %v508_v49 = vsub.s32 %v1338_v43, %v1340_v44 }
 0x145   :  { %v955_v50 = vpop.f32.mrb[4].mxu0  ;;  %v249_v52 = vsub.f32 %v818_v42, %v227_v48  ;;  %v524_v48 = vadd.s32 4294967272, %v1338_v43 }
 0x146   :  { %v166_v53 = vpop.f32.mrb[5].mxu0  ;;  %v230_v55 = vmul.f32 2.0, %v955_v50  ;;  %v1223_v50 = vmov 1.0  }
 0x147   :  { %265 = vmin.index.xlane.f32.xlu0 %v248_v51  ;;  %267 = vmin.index.xlane.f32.xlu1 %v249_v52  ;;  %v229_v54 = vmul.f32 2.0, %v166_v53  ;;  %v520_v51 = vsub.s32 %v517_v46, %v1340_v44  ;;  %v531_v52 = vadd.s32 4294967264, %v1338_v43  ;;  %v587_v46 = vadd.s32 4294967200, %v1338_v43 }
 0x148   :  { %v252_v63 = vsub.f32 %v818_v42, %v230_v55  ;;  %v527_v55 = vsub.s32 %v524_v48, %v1340_v44 }
 0x149   :  { %v958_v56 = vpop.f32.mrb[6].mxu0  ;;  %v251_v58 = vsub.f32 %v818_v42, %v229_v54 }
 0x14a   :  { %v176_v59 = vpop.f32.mrb[7].mxu0  ;;  %v232_v61 = vmul.f32 2.0, %v958_v56  ;;  %v538_v56 = vadd.s32 4294967256, %v1338_v43 }
 0x14b   :  { %269 = vmin.index.xlane.f32.xlu1 %v250_v57  ;;  %v231_v60 = vmul.f32 2.0, %v176_v59  ;;  %271 = vmin.index.xlane.f32.xlu0 %v251_v58 }
 0x14c   :  { %v254_v5 = vsub.f32 %v818_v42, %v232_v61  ;;  %v545_v61 = vadd.s32 4294967248, %v1338_v43 }
 0x14d   :  { %v961_v62 = vpop.f32.mrb[8].mxu0  ;;  %v253_v0 = vsub.f32 %v818_v42, %v231_v60  ;;  %v534_v60 = vsub.s32 %v531_v52, %v1340_v44 }
 0x14e   :  { %v186_v1 = vpop.f32.mrb[9].mxu0  ;;  %v234_v3 = vmul.f32 2.0, %v961_v62 }
 0x14f   :  { %273 = vmin.index.xlane.f32.xlu1 %v252_v63  ;;  %v233_v2 = vmul.f32 2.0, %v186_v1  ;;  %275 = vmin.index.xlane.f32.xlu0 %v253_v0  ;;  %v541_v1 = vsub.s32 %v538_v56, %v1340_v44  ;;  %v601_v56 = vadd.s32 4294967184, %v1338_v43 }
 0x150   :  { %v256_v12 = vsub.f32 %v818_v42, %v234_v3  ;;  %v552_v3 = vadd.s32 4294967240, %v1338_v43 }
 0x151   :  { %v964_v4 = vpop.f32.mrb[10].mxu0  ;;  %v255_v6 = vsub.f32 %v818_v42, %v233_v2 }
 0x152   :  { %v196_v7 = vpop.f32.mrb[11].mxu0  ;;  %v236_v10 = vmul.f32 2.0, %v964_v4 }
 0x153   :  { %277 = vmin.index.xlane.f32.xlu1 %v254_v5  ;;  %v235_v9 = vmul.f32 2.0, %v196_v7  ;;  %279 = vmin.index.xlane.f32.xlu0 %v255_v6  ;;  %v548_v6 = vsub.s32 %v545_v61, %v1340_v44  ;;  %v559_v7 = vadd.s32 4294967232, %v1338_v43 }
 0x154   :  { %v258_v18 = vsub.f32 %v818_v42, %v236_v10 }
 0x155   :  { %v967_v11 = vpop.f32.mrb[12].mxu0  ;;  %v257_v13 = vsub.f32 %v818_v42, %v235_v9 }
 0x156   :  { %v206_v14 = vpop.f32.mrb[13].mxu0  ;;  %v238_v16 = vmul.f32 2.0, %v967_v11 }
 0x157   :  { %281 = vmin.index.xlane.f32.xlu1 %v256_v12  ;;  %v237_v15 = vmul.f32 2.0, %v206_v14  ;;  %283 = vmin.index.xlane.f32.xlu0 %v257_v13  ;;  %v566_v12 = vadd.s32 4294967224, %v1338_v43  ;;  %v555_v14 = vsub.s32 %v552_v3, %v1340_v44 }
 0x158   :  { %v260_v23 = vsub.f32 %v818_v42, %v238_v16 }
 0x159   :  { %v970_v17 = vpop.f32.mrb[14].mxu0  ;;  %v259_v19 = vsub.f32 %v818_v42, %v237_v15 }
 0x15a   :  { %v216_v20 = vpop.f32.mrb[15].mxu0  ;;  %v240_v22 = vmul.f32 2.0, %v970_v17  ;;  %v562_v17 = vsub.s32 %v559_v7, %v1340_v44 }
 0x15b   :  { %285 = vmin.index.xlane.f32.xlu1 %v258_v18  ;;  %v239_v21 = vmul.f32 2.0, %v216_v20  ;;  %287 = vmin.index.xlane.f32.xlu0 %v259_v19  ;;  %v573_v18 = vadd.s32 4294967216, %v1338_v43 }
 0x15c   :  { %v262_v40 = vsub.f32 %v818_v42, %v240_v22  ;;  %v569_v22 = vsub.s32 %v566_v12, %v1340_v44 }
 0x15d   :  { %v261_v24 = vsub.f32 %v818_v42, %v239_v21  ;;  %v513_v42 = vsub.s32 %v510_v45, %v1340_v44  ;;  %v576_v45 = vsub.s32 %v573_v18, %v1340_v44 }
 0x15f   :  { %289 = vmin.index.xlane.f32.xlu1 %v260_v23  ;;  %291 = vmin.index.xlane.f32.xlu0 %v261_v24  ;;  %v580_v24 = vadd.s32 4294967208, %v1338_v43 }
 0x161   :  { %v583_v52 = vsub.s32 %v580_v24, %v1340_v44 }
 0x163   :  { %293 = vmin.index.xlane.f32.xlu1 %v262_v40 }
 0x1d0   :  { %v264_v47 = vpop.xlane.xlu0 %263 }
 0x1d1   :  { %vm297_vm0 = vcmp.eq.s32.totalorder %v1338_v43, %v264_v47  ;;  %v509_v57 = vrot.slane %v264_v47, %v508_v49 }
 0x1d2   :  { %1003 = vmatprep.mubr.msk.f32.mxu1 %vm297_vm0, %v1223_v50  ;;  %vm564_vm0 = vcmask 589312  }
 0x1d4   :  { %v266_v53 = vpop.xlane.xlu0 %265  ;;  %v268_v54 = vpop.xlane.xlu1 %267 }
 0x1d5   :  { %vm298_vm2 = vcmp.eq.s32.totalorder %v1338_v43, %v266_v53  ;;  %v514_v58 = vrot.slane %v266_v53, %v513_v42  ;;  %vm299_vm3 = vcmp.eq.s32.totalorder %v1338_v43, %v268_v54  ;;  %v521_v59 = vrot.slane %v268_v54, %v520_v51 }
 0x1d6   :  { %1004 = vmatmul.mubr.msk.f32.vlgmr.msra.gmra.mrb[0].mxu1 %vm298_vm2, %v1223_v50  ;;  %v594_v42 = vadd.s32 4294967192, %v1338_v43 }
 0x1d7   :  { %v516_v62 = vsel %vm515_vm1, %v514_v58, %v509_v57  ;;  %1006 = vmatprep.mubr.msk.f32.mxu1 %vm299_vm3, %v1223_v50  ;;  %vm571_vm1 = vcmask 654912  }
 0x1d8   :  { %v270_v63 = vpop.xlane.xlu1 %269  ;;  %v272_v0 = vpop.xlane.xlu0 %271  ;;  %v523_v4 = vsel %vm522_vm4, %v521_v59, %v516_v62  ;;  %vm578_vm4 = vcmask 720512   ;;  %v608_v62 = vadd.s32 4294967176, %v1338_v43 }
 0x1d9   :  { %vm300_vm6 = vcmp.eq.s32.totalorder %v1338_v43, %v270_v63  ;;  %v528_v2 = vrot.slane %v270_v63, %v527_v55  ;;  %vm301_vm7 = vcmp.eq.s32.totalorder %v1338_v43, %v272_v0  ;;  %v535_v5 = vrot.slane %v272_v0, %v534_v60 }
 0x1da   :  { %1007 = vmatmul.mubr.msk.f32.gmra.mrb[2].mxu1 %vm300_vm6, %v1223_v50  ;;  %v590_v55 = vsub.s32 %v587_v46, %v1340_v44  ;;  %v597_v60 = vsub.s32 %v594_v42, %v1340_v44 }
 0x1db   :  { %v530_v9 = vsel %vm529_vm5, %v528_v2, %v523_v4  ;;  %1009 = vmatprep.mubr.msk.f32.mxu1 %vm301_vm7, %v1223_v50  ;;  %vm585_vm5 = vcmask 786112  }
 0x1dc   :  { %v274_v10 = vpop.xlane.xlu1 %273  ;;  %v276_v11 = vpop.xlane.xlu0 %275  ;;  %v537_v15 = vsel %vm536_vm8, %v535_v5, %v530_v9  ;;  %vm592_vm8 = vcmask 851712  }
 0x1dd   :  { %vm302_vm10 = vcmp.eq.s32.totalorder %v1338_v43, %v274_v10  ;;  %v542_v13 = vrot.slane %v274_v10, %v541_v1  ;;  %vm303_vm11 = vcmp.eq.s32.totalorder %v1338_v43, %v276_v11  ;;  %v549_v16 = vrot.slane %v276_v11, %v548_v6 }
 0x1de   :  { %1010 = vmatmul.mubr.msk.f32.gmra.mrb[4].mxu1 %vm302_vm10, %v1223_v50  ;;  %v604_v1 = vsub.s32 %v601_v56, %v1340_v44  ;;  %v611_v6 = vsub.s32 %v608_v62, %v1340_v44 }
 0x1df   :  { %v544_v19 = vsel %vm543_vm9, %v542_v13, %v537_v15  ;;  %1012 = vmatprep.mubr.msk.f32.mxu1 %vm303_vm11, %v1223_v50  ;;  %vm599_vm9 = vcmask 917312  }
 0x1e0   :  { %v278_v20 = vpop.xlane.xlu1 %277  ;;  %v280_v21 = vpop.xlane.xlu0 %279  ;;  %v551_v40 = vsel %vm550_vm12, %v549_v16, %v544_v19  ;;  %vm606_vm12 = vcmask 982912  }
 0x1e1   :  { %vm304_vm14 = vcmp.eq.s32.totalorder %v1338_v43, %v278_v20  ;;  %v556_v23 = vrot.slane %v278_v20, %v555_v14  ;;  %vm305_vm15 = vcmp.eq.s32.totalorder %v1338_v43, %v280_v21  ;;  %v563_v41 = vrot.slane %v280_v21, %v562_v17 }
 0x1e2   :  { %1013 = vmatmul.mubr.msk.f32.gmra.mrb[6].mxu1 %vm304_vm14, %v1223_v50 }
 0x1e3   :  { %v558_v47 = vsel %vm557_vm13, %v556_v23, %v551_v40  ;;  %1015 = vmatprep.mubr.msk.f32.mxu1 %vm305_vm15, %v1223_v50  ;;  %vm613_vm13 = vcmask 1048512  }
 0x1e4   :  { %v282_v48 = vpop.xlane.xlu1 %281  ;;  %v284_v49 = vpop.xlane.xlu0 %283  ;;  %v565_v53 = vsel %vm564_vm0, %v563_v41, %v558_v47 }
 0x1e5   :  { %vm306_vm2 = vcmp.eq.s32.totalorder %v1338_v43, %v282_v48  ;;  %v570_v51 = vrot.slane %v282_v48, %v569_v22  ;;  %vm307_vm3 = vcmp.eq.s32.totalorder %v1338_v43, %v284_v49  ;;  %v577_v54 = vrot.slane %v284_v49, %v576_v45 }
 0x1e6   :  { %1016 = vmatmul.mubr.msk.f32.gmra.mrb[8].mxu1 %vm306_vm2, %v1223_v50 }
 0x1e7   :  { %v572_v57 = vsel %vm571_vm1, %v570_v51, %v565_v53  ;;  %1018 = vmatprep.mubr.msk.f32.mxu1 %vm307_vm3, %v1223_v50 }
 0x1e8   :  { %v286_v58 = vpop.xlane.xlu1 %285  ;;  %v288_v59 = vpop.xlane.xlu0 %287  ;;  %v579_v63 = vsel %vm578_vm4, %v577_v54, %v572_v57 }
 0x1e9   :  { %vm308_vm6 = vcmp.eq.s32.totalorder %v1338_v43, %v286_v58  ;;  %v584_v61 = vrot.slane %v286_v58, %v583_v52  ;;  %vm309_vm7 = vcmp.eq.s32.totalorder %v1338_v43, %v288_v59  ;;  %v591_v0 = vrot.slane %v288_v59, %v590_v55 }
 0x1ea   :  { %1019 = vmatmul.mubr.msk.f32.gmra.mrb[10].mxu1 %vm308_vm6, %v1223_v50 }
 0x1eb   :  { %v586_v2 = vsel %vm585_vm5, %v584_v61, %v579_v63  ;;  %1021 = vmatprep.mubr.msk.f32.mxu1 %vm309_vm7, %v1223_v50 }
 0x1ec   :  { %v290_v3 = vpop.xlane.xlu1 %289  ;;  %v292_v4 = vpop.xlane.xlu0 %291  ;;  %v593_v7 = vsel %vm592_vm8, %v591_v0, %v586_v2 }
 0x1ed   :  { %vm310_vm10 = vcmp.eq.s32.totalorder %v1338_v43, %v290_v3  ;;  %v598_v5 = vrot.slane %v290_v3, %v597_v60  ;;  %vm311_vm11 = vcmp.eq.s32.totalorder %v1338_v43, %v292_v4  ;;  %v605_v9 = vrot.slane %v292_v4, %v604_v1 }
 0x1ee   :  { %1022 = vmatmul.mubr.msk.f32.gmra.mrb[12].mxu1 %vm310_vm10, %v1223_v50 }
 0x1ef   :  { %v600_v10 = vsel %vm599_vm9, %v598_v5, %v593_v7  ;;  %1024 = vmatprep.mubr.msk.f32.mxu1 %vm311_vm11, %v1223_v50 }
 0x1f0   :  { %v294_v11 = vpop.xlane.xlu1 %293  ;;  %v607_v13 = vsel %vm606_vm12, %v605_v9, %v600_v10 }
 0x1f1   :  { %vm312_vm14 = vcmp.eq.s32.totalorder %v1338_v43, %v294_v11  ;;  %v612_v12 = vrot.slane %v294_v11, %v611_v6 }
 0x1f2   :  { %1025 = vmatmul.mubr.msk.f32.gmra.mrb[14].mxu1 %vm312_vm14, %v1223_v50 }
 0x1f3   :  { %v614_v14 = vsel %vm613_vm13, %v612_v12, %v607_v13 }
 0x1f4   :  { %615 = vst [vmem:[#allocation8] sm:$0x1] %v614_v14 }
 0x2a9   :  { %v1005_v15 = vpop.f32.mrb[0].mxu1 }
 0x2aa   :  { %491 = vst [vmem:[#allocation7 + $0x8] sm:$0xff] %v1005_v15  ;;  %v700_v44 = vsub.f32 %v1005_v15, %v1290_v25  ;;  %v411_v16 = vpop.f32.mrb[1].mxu1 }
 0x2ab   :  { %490 = vst [vmem:[#allocation7] sm:$0xff] %v411_v16  ;;  %v699_v17 = vsub.f32 %v411_v16, %v1287_v8 }
 0x2ac   :  { %v716_v18 = vmul.f32 %v700_v44, %v700_v44 }
 0x2ad   :  { %v715_v19 = vmul.f32 %v699_v17, %v699_v17  ;;  %v1008_v20 = vpop.f32.mrb[2].mxu1 }
 0x2ae   :  { %493 = vst [vmem:[#allocation7 + $0x18] sm:$0xff] %v1008_v20  ;;  %v421_v21 = vpop.f32.mrb[3].mxu1  ;;  %v702_v22 = vsub.f32 %v1008_v20, %v1296_v27 }
 0x2af   :  { %v747_v43 = vadd.f32 %v716_v18, %v715_v19  ;;  %492 = vst [vmem:[#allocation7 + $0x10] sm:$0xff] %v421_v21  ;;  %v701_v50 = vsub.f32 %v421_v21, %v1292_v26 }
 0x2b0   :  { %v718_v25 = vmul.f32 %v702_v22, %v702_v22 }
 0x2b1   :  { %v717_v23 = vmul.f32 %v701_v50, %v701_v50  ;;  %v1011_v24 = vpop.f32.mrb[4].mxu1 }
 0x2b2   :  { %495 = vst [vmem:[#allocation7 + $0x28] sm:$0xff] %v1011_v24  ;;  %v431_v40 = vpop.f32.mrb[5].mxu1  ;;  %v704_v45 = vsub.f32 %v1011_v24, %v1302_v29 }
 0x2b3   :  { %v748_v41 = vadd.f32 %v747_v43, %v717_v23  ;;  %494 = vst [vmem:[#allocation7 + $0x20] sm:$0xff] %v431_v40  ;;  %v703_v8 = vsub.f32 %v431_v40, %v1298_v28 }
 0x2b4   :  { %v720_v27 = vmul.f32 %v704_v45, %v704_v45 }
 0x2b5   :  { %v719_v46 = vmul.f32 %v703_v8, %v703_v8  ;;  %v749_v47 = vadd.f32 %v748_v41, %v718_v25  ;;  %v1014_v48 = vpop.f32.mrb[6].mxu1 }
 0x2b6   :  { %497 = vst [vmem:[#allocation7 + $0x38] sm:$0xff] %v1014_v48  ;;  %v441_v49 = vpop.f32.mrb[7].mxu1  ;;  %v706_v26 = vsub.f32 %v1014_v48, %v1308_v31 }
 0x2b7   :  { %v750_v42 = vadd.f32 %v749_v47, %v719_v46  ;;  %496 = vst [vmem:[#allocation7 + $0x30] sm:$0xff] %v441_v49  ;;  %v705_v51 = vsub.f32 %v441_v49, %v1304_v30 }
 0x2b8   :  { %v722_v55 = vmul.f32 %v706_v26, %v706_v26 }
 0x2b9   :  { %v721_v52 = vmul.f32 %v705_v51, %v705_v51  ;;  %v751_v53 = vadd.f32 %v750_v42, %v720_v27  ;;  %v1017_v54 = vpop.f32.mrb[8].mxu1 }
 0x2ba   :  { %499 = vst [vmem:[#allocation7 + $0x48] sm:$0xff] %v1017_v54  ;;  %v451_v29 = vpop.f32.mrb[9].mxu1  ;;  %v708_v28 = vsub.f32 %v1017_v54, %v1314_v33 }
 0x2bb   :  { %v752_v56 = vadd.f32 %v751_v53, %v721_v52  ;;  %498 = vst [vmem:[#allocation7 + $0x40] sm:$0xff] %v451_v29  ;;  %v707_v57 = vsub.f32 %v451_v29, %v1310_v32 }
 0x2bc   :  { %v724_v61 = vmul.f32 %v708_v28, %v708_v28 }
 0x2bd   :  { %v723_v58 = vmul.f32 %v707_v57, %v707_v57  ;;  %v753_v59 = vadd.f32 %v752_v56, %v722_v55  ;;  %v1020_v60 = vpop.f32.mrb[10].mxu1 }
 0x2be   :  { %501 = vst [vmem:[#allocation7 + $0x58] sm:$0xff] %v1020_v60  ;;  %v461_v31 = vpop.f32.mrb[11].mxu1  ;;  %v710_v30 = vsub.f32 %v1020_v60, %v1320_v35 }
 0x2bf   :  { %v754_v62 = vadd.f32 %v753_v59, %v723_v58  ;;  %500 = vst [vmem:[#allocation7 + $0x50] sm:$0xff] %v461_v31  ;;  %v709_v63 = vsub.f32 %v461_v31, %v1316_v34 }
 0x2c0   :  { %v726_v3 = vmul.f32 %v710_v30, %v710_v30 }
 0x2c1   :  { %v725_v0 = vmul.f32 %v709_v63, %v709_v63  ;;  %v755_v1 = vadd.f32 %v754_v62, %v724_v61  ;;  %v1023_v2 = vpop.f32.mrb[12].mxu1 }
 0x2c2   :  { %503 = vst [vmem:[#allocation7 + $0x68] sm:$0xff] %v1023_v2  ;;  %v471_v33 = vpop.f32.mrb[13].mxu1  ;;  %v712_v32 = vsub.f32 %v1023_v2, %v1326_v37 }
 0x2c3   :  { %v756_v4 = vadd.f32 %v755_v1, %v725_v0  ;;  %502 = vst [vmem:[#allocation7 + $0x60] sm:$0xff] %v471_v33  ;;  %v711_v5 = vsub.f32 %v471_v33, %v1322_v36 }
 0x2c4   :  { %v728_v10 = vmul.f32 %v712_v32, %v712_v32 }
 0x2c5   :  { %v727_v6 = vmul.f32 %v711_v5, %v711_v5  ;;  %v757_v7 = vadd.f32 %v756_v4, %v726_v3  ;;  %v1026_v9 = vpop.f32.mrb[14].mxu1 }
 0x2c6   :  { %505 = vst [vmem:[#allocation7 + $0x78] sm:$0xff] %v1026_v9  ;;  %v481_v35 = vpop.f32.mrb[15].mxu1  ;;  %v714_v34 = vsub.f32 %v1026_v9, %v1332_v39 }
 0x2c7   :  { %v758_v11 = vadd.f32 %v757_v7, %v727_v6  ;;  %504 = vst [vmem:[#allocation7 + $0x70] sm:$0xff] %v481_v35  ;;  %v713_v12 = vsub.f32 %v481_v35, %v1328_v38 }
 0x2c8   :  { %v730_v15 = vmul.f32 %v714_v34, %v714_v34 }
 0x2c9   :  { %v729_v13 = vmul.f32 %v713_v12, %v713_v12  ;;  %v759_v14 = vadd.f32 %v758_v11, %v728_v10 }
 0x2cb   :  { %v760_v44 = vadd.f32 %v759_v14, %v729_v13 }
 0x2cd   :  { %v761_v37 = vadd.f32 %v760_v44, %v730_v15 }
 0x2cf   :  { %762 = vadd.xlane.f32.xlu0 %v761_v37 }
 0x2d0   :  { %1156 = shalt.err (!%p1153_p6)
}
 0x2d1   :  { %s1157_s26 = scalar_lea.hbm %s1465_s4, 16 }
 0x2d2   :  { %p1158_p7 = scmp.ne.s32.totalorder %s1465_s4, %s1157_s26  ;;  %p1161_p8 = scmp.lt.u32.totalorder %s1157_s26, %s1465_s4 }
 0x2d4   :  { %p1163_p9 = pnand %p1161_p8, %p1158_p7 }
 0x2d6   :  { %1166 = shalt.err (!%p1163_p9)
}
 0x2d7   :  { %794 = dma.vmem_to_hbm [thread:$0]  %s792_s19, 16, %s1465_s4, [#allocation9]  }
 0x2d8   :  { %s1167_s10 = scalar_lea.vmem %s779_s21, 2048  ;;  %p1172_p11 = scmp.lt.s32.totalorder %s779_s21, %s779_s21 }
 0x2d9   :  { %p1168_p10 = scmp.ne.s32.totalorder %s779_s21, %s1167_s10  ;;  %p1173_p12 = scmp.lt.s32.totalorder %s1167_s10, %s1167_s10 }
 0x2db   :  { %p1174_p13 = por %p1173_p12, %p1172_p11 }
 0x2dd   :  { %p1175_p0 = pnand %p1174_p13, %p1168_p10 }
 0x2df   :  { %1178 = shalt.err (!%p1175_p0)
}
 0x2e0   :  { %s1179_s13 = scalar_lea.hbm %s1464_s3, 2048 }
 0x2e1   :  { %p1180_p1 = scmp.ne.s32.totalorder %s1464_s3, %s1179_s13  ;;  %p1183_p2 = scmp.lt.u32.totalorder %s1179_s13, %s1464_s3 }
 0x2e3   :  { %p1185_p3 = pnand %p1183_p2, %p1180_p1 }
 0x2e5   :  { %1188 = shalt.err (!%p1185_p3)
}
 0x2e6   :  { %784 = dma.vmem_to_hbm [thread:$0]  %s779_s21, 2048, %s1464_s3, [#allocation4], %s1220_s28, %s1220_s28, %s1221_s29  }
 0x2e7   :  { %s1226_s1 = smov [#allocation10]  }
 0x2e8   :  { %s801_s18 = sshll.u32 %s1226_s1, 4  ;;  %s802_s18 = int_to_ptr.vmem [resolvable:$true] %s801_s18 }
 0x2e9   :  { %s1189_s19 = scalar_lea.vmem %s802_s18, 16  ;;  %s1193_s20 = scalar_lea.vmem %s802_s18, 32 }
 0x2ea   :  { %p1190_p4 = scmp.ne.s32.totalorder %s802_s18, %s1189_s19  ;;  %p1194_p5 = scmp.lt.s32.totalorder %s802_s18, %s802_s18 }
 0x2eb   :  { %p1195_p6 = scmp.lt.s32.totalorder %s1193_s20, %s1189_s19 }
 0x2ed   :  { %p1196_p7 = por %p1195_p6, %p1194_p5 }
 0x2ef   :  { %p1197_p8 = pnand %p1196_p7, %p1190_p4 }
 0x35c   :  { %v763_v36 = vpop.xlane.xlu0 %762 }
 0x35d   :  { %v764_v38 = vrot.slane %v763_v36, 4 }
 0x35f   :  { %v765_v39 = vadd.f32 %v764_v38, %v763_v36 }
 0x361   :  { %v766_v16 = vrot.slane %v765_v39, 2 }
 0x363   :  { %v767_v17 = vadd.f32 %v766_v16, %v765_v39 }
 0x365   :  { %v768_v18 = vrot.slane %v767_v17, 1 }
 0x367   :  { %v769_v19 = vadd.f32 %v768_v18, %v767_v17 }
 0x369   :  { %1091 = vpush %v769_v19 }
 0x39a   :  { %s1092_s2 = spop %1091 }
 0x39b   :  { %v771_v20 = vstv %s1092_s2 }
 0x39c   :  { %772 = vst [vmem:[#allocation10] sm:$0x1] %v771_v20 }
 0x39d   :  { %1200 = shalt.err (!%p1197_p8)
}
 0x39e   :  { %s1201_s29 = scalar_lea.hbm %s1466_s5, 16 }
 0x39f   :  { %p1202_p9 = scmp.ne.s32.totalorder %s1466_s5, %s1201_s29  ;;  %p1205_p10 = scmp.lt.u32.totalorder %s1201_s29, %s1466_s5 }
 0x3a1   :  { %p1207_p11 = pnand %p1205_p10, %p1202_p9 }
 0x3a3   :  { %1210 = shalt.err (!%p1207_p11)
}
 0x3a4   :  { %804 = dma.vmem_to_hbm [thread:$0]  %s802_s18, 16, %s1466_s5, [#allocation9]  }
 0x3a5   :  { %1215 = dma.done.wait [#allocation4], 2048  }
 0x3a6   :  { %1216 = vsyncadd [#allocation4], 4294965248 }
 0x3a7   :  { %1217 = dma.done.wait [#allocation9], 32  }
 0x3a8   :  { %1218 = vsyncadd [#allocation9], 4294967264 }
 0x3a9   :  { %814 = vsyncpa [#allocation3], 1 }
 0x3aa   :  { %815 = vsyncpa [#allocation6], 1 }
 0x3ab   :  { %816 = vsyncpa [#allocation4], 1 }
 0x3ac   :  { %817 = vsyncpa [#allocation9], 1 }

</bundles_post_ra>
